<compile_context>
chip_gen: v5e
topology: v5e:2x2
jax: 0.10.0
libtpu: 0.0.40
codegen_flags: <defaults>
</compile_context>

<pallas_src>
import jax
import jax.numpy as jnp
from jax.experimental import pallas as pl
from jax.experimental.pallas import tpu as pltpu


def mlp_kernel(x_ref, w1_ref, b1_ref, w2_ref, b2_ref, o_ref):
    # ---- Cast x -> bf16 inside the kernel (VPU); no standalone XLA convert pass over HBM.
    xb = x_ref[...].astype(jnp.bfloat16)

    # ---- Layer 1: x @ W1 on the MXU (bf16 in, f32 accumulation); bias + ReLU in f32 on VPU.
    h = jnp.dot(xb, w1_ref[...], preferred_element_type=jnp.float32)      # (TB, H) f32
    h = jnp.maximum(h + b1_ref[...], 0.0)                                 # b1 is (1, H) f32

    # ---- Dropout: inference semantics -> identity (PyTorch nn.Dropout in eval mode).
    # TODO(synk): training-mode dropout (pltpu.prng_random_bits mask * 1/(1-p)) not implemented.

    # ---- Layer 2: w2_row (1, H) contracted with h (TB, H) over H -> (1, TB), all in f32.
    # Lane-dense output row -> unmasked full-lane store instead of a masked [TB, 1] column.
    y = jax.lax.dot_general(
        w2_ref[...], h,
        dimension_numbers=(((1,), (1,)), ((), ())),
        preferred_element_type=jnp.float32)                               # (1, TB) f32

    # b2 is a single f32 scalar read from a 1-D SMEM ref (4 bytes, no padded VMEM tile).
    o_ref[...] = jax.nn.sigmoid(y + b2_ref[0])


def simple_nn_forward(x, w1, b1, w2, b2, *, block_batch=4096):
    """SimpleNN forward.  x: [B, D]; w1: [D, H]; b1: [1, H]; w2: [H, 1]; b2: [1, 1] or [1]."""
    B, D = x.shape
    H = w1.shape[1]

    # Batch tile selection:
    #  * B fits in one block  -> single grid step (best on single-TC v5e/v6e; per-step
    #    overhead dominates the tiny per-step DMA for this workload).
    #  * larger B             -> block_batch-row tiles (multiple of 128 so both the x sublane
    #    dim and the lane-dense output row tile cleanly); partial last block is handled by
    #    Pallas (OOB reads are undefined, OOB writes dropped) -- no wrapper-side pad.
    # On v7x (2 TCs) prefer block_batch <= ceil(B/2) rounded to 128 so both cores get work.
    assert block_batch % 128 == 0
    if B <= block_batch:
        tb = B
        n_blocks = 1
    else:
        tb = block_batch
        n_blocks = pl.cdiv(B, tb)

    # Tiny, B-independent operands: cast/reshape in the wrapper (negligible HBM traffic).
    w1_c = w1.astype(jnp.bfloat16)                 # (D, H) bf16 MXU operand
    b1_f = b1.reshape(1, H).astype(jnp.float32)    # (1, H) f32
    w2_row = w2.reshape(1, H).astype(jnp.float32)  # (1, H) f32 (layer 2 stays f32)
    b2_f = b2.reshape(1).astype(jnp.float32)       # (1,)   f32 SMEM scalar

    vmem = pltpu.MemorySpace.VMEM
    out_row = pl.pallas_call(
        mlp_kernel,
        out_shape=jax.ShapeDtypeStruct((1, B), jnp.float32),
        grid=(n_blocks,),
        in_specs=[
            # x: streamed / double-buffered, one (tb, D) tile per grid step, native dtype.
            pl.BlockSpec((tb, D), lambda i: (i, 0), memory_space=vmem),
            # W1, b1, w2_row: VMEM-resident across the whole grid (constant block index).
            pl.BlockSpec((D, H), lambda i: (0, 0), memory_space=vmem),
            pl.BlockSpec((1, H), lambda i: (0, 0), memory_space=vmem),
            pl.BlockSpec((1, H), lambda i: (0, 0), memory_space=vmem),
            # b2: 1-D SMEM scalar (4 bytes, no padded 2-D SMEM block).
            pl.BlockSpec(memory_space=pltpu.MemorySpace.SMEM),
        ],
        # Lane-dense output: one (1, tb) row per grid step.
        out_specs=pl.BlockSpec((1, tb), lambda i: (0, i), memory_space=vmem),
        compiler_params=pltpu.CompilerParams(
            dimension_semantics=("parallel",)),   # batch axis independent -> megacore-shardable
    )(x, w1_c, b1_f, w2_row, b2_f)

    # (1, B) row-major == (B, 1).
    return out_row.reshape(B, 1)


if __name__ == "__main__":
    key = jax.random.PRNGKey(0)
    B, D, H = 256, 16, 64   # small demo shapes: batch, input_dim, hidden_dim (module default H=64)

    k_x, k_w1, k_b1, k_w2, k_b2 = jax.random.split(key, 5)

    # Deterministic init mimicking nn.Linear's U(-1/sqrt(fan_in), 1/sqrt(fan_in))
    lim1 = 1.0 / jnp.sqrt(D)
    lim2 = 1.0 / jnp.sqrt(H)
    x = jax.random.normal(k_x, (B, D), dtype=jnp.float32)
    w1 = jax.random.uniform(k_w1, (D, H), minval=-lim1, maxval=lim1, dtype=jnp.float32)
    b1 = jax.random.uniform(k_b1, (1, H), minval=-lim1, maxval=lim1, dtype=jnp.float32)
    w2 = jax.random.uniform(k_w2, (H, 1), minval=-lim2, maxval=lim2, dtype=jnp.float32)
    b2 = jax.random.uniform(k_b2, (1, 1), minval=-lim2, maxval=lim2, dtype=jnp.float32)

    fwd = jax.jit(simple_nn_forward)
    out = fwd(x, w1, b1, w2, b2)
    jax.block_until_ready(out)

    # Reference check (pure JAX, f32). bf16 layer-1 operands -> loosened tolerance.
    ref = jax.nn.sigmoid(jnp.maximum(x @ w1 + b1, 0.0) @ w2 + b2)
    assert out.shape == (B, 1)
    max_err = float(jnp.max(jnp.abs(out - ref)))
    assert jnp.allclose(out, ref, atol=2e-2, rtol=2e-2), f"max abs err {max_err}"

    print("KERNEL_OK")
</pallas_src>

<mosaic_0001>
module attributes {stable_mosaic.version = 11 : i64} {
  func.func @mlp_kernel(%arg0: i32, %arg1: memref<256x16xf32, #tpu.memory_space<vmem>>, %arg2: memref<16x64xbf16, #tpu.memory_space<vmem>>, %arg3: memref<1x64xf32, #tpu.memory_space<vmem>>, %arg4: memref<1x64xf32, #tpu.memory_space<vmem>>, %arg5: memref<1xf32, #tpu.memory_space<smem>>, %arg6: memref<1x256xf32, #tpu.memory_space<vmem>>) attributes {dimension_semantics = [#tpu.dimension_semantics<parallel>], iteration_bounds = array<i64: 1>, scalar_prefetch = 0 : i64, scratch_operands = 0 : i64, tpu.core_type = #tpu.core_type<tc>, window_params = [{transform_indices = @transform_0, window_bounds = array<i64: 256, 16>}, {pipeline_mode = #tpu.pipeline_mode<synchronous>, transform_indices = @transform_1, window_bounds = array<i64: 16, 64>}, {pipeline_mode = #tpu.pipeline_mode<synchronous>, transform_indices = @transform_2, window_bounds = array<i64: 1, 64>}, {pipeline_mode = #tpu.pipeline_mode<synchronous>, transform_indices = @transform_3, window_bounds = array<i64: 1, 64>}, {transform_indices = @transform_4, window_bounds = array<i64: 1>}, {transform_indices = @transform_5, window_bounds = array<i64: 1, 256>}]} {
    %c0 = arith.constant 0 : index
    %c0_0 = arith.constant 0 : index
    %0 = vector.load %arg1[%c0, %c0_0] : memref<256x16xf32, #tpu.memory_space<vmem>>, vector<256x16xf32>
    %1 = arith.truncf %0 : vector<256x16xf32> to vector<256x16xbf16>
    %c0_1 = arith.constant 0 : index
    %c0_2 = arith.constant 0 : index
    %2 = vector.load %arg2[%c0_1, %c0_2] : memref<16x64xbf16, #tpu.memory_space<vmem>>, vector<16x64xbf16>
    %cst = arith.constant dense<0.000000e+00> : vector<256x64xf32>
    %3 = tpu.matmul %1, %2, %cst {dimension_numbers = #tpu.dot_dimension_numbers<[1], [0], [0], [1], [0, 0, 1, 1], [], []>} : vector<256x16xbf16>, vector<16x64xbf16>, vector<256x64xf32> -> vector<256x64xf32>
    %c0_3 = arith.constant 0 : index
    %c0_4 = arith.constant 0 : index
    %4 = vector.load %arg3[%c0_3, %c0_4] : memref<1x64xf32, #tpu.memory_space<vmem>>, vector<1x64xf32>
    %5 = vector.broadcast %4 : vector<1x64xf32> to vector<256x64xf32>
    %6 = arith.addf %3, %5 : vector<256x64xf32>
    %cst_5 = arith.constant 0.000000e+00 : f32
    %7 = vector.broadcast %cst_5 : f32 to vector<256x64xf32>
    %8 = arith.maximumf %6, %7 : vector<256x64xf32>
    %c0_6 = arith.constant 0 : index
    %c0_7 = arith.constant 0 : index
    %9 = vector.load %arg4[%c0_6, %c0_7] : memref<1x64xf32, #tpu.memory_space<vmem>>, vector<1x64xf32>
    %cst_8 = arith.constant dense<0.000000e+00> : vector<1x256xf32>
    %10 = tpu.matmul %9, %8, %cst_8 {dimension_numbers = #tpu.dot_dimension_numbers<[1], [1], [0], [0], [0, 0, 1, 0], [], []>} : vector<1x64xf32>, vector<256x64xf32>, vector<1x256xf32> -> vector<1x256xf32>
    %c0_9 = arith.constant 0 : index
    %11 = memref.load %arg5[%c0_9] : memref<1xf32, #tpu.memory_space<smem>>
    %12 = vector.broadcast %11 : f32 to vector<1x256xf32>
    %13 = arith.addf %10, %12 : vector<1x256xf32>
    %14 = arith.negf %13 : vector<1x256xf32>
    %15 = math.exp %14 : vector<1x256xf32>
    %cst_10 = arith.constant 1.000000e+00 : f32
    %16 = vector.broadcast %cst_10 : f32 to vector<1x256xf32>
    %17 = arith.addf %16, %15 : vector<1x256xf32>
    %18 = arith.divf %16, %17 : vector<1x256xf32>
    %c0_11 = arith.constant 0 : index
    %c0_12 = arith.constant 0 : index
    %19 = vector.load %arg6[%c0_11, %c0_12] : memref<1x256xf32, #tpu.memory_space<vmem>>, vector<1x256xf32>
    tpu.vector_store %arg6[%c0_11, %c0_12], %18 {strides = array<i32>} : memref<1x256xf32, #tpu.memory_space<vmem>>, vector<1x256xf32>,
    return
  }
  func.func @transform_0(%arg0: i32) -> (i32, i32) {
    %c0_i32 = arith.constant 0 : i32
    %c0_i32_0 = arith.constant 0 : i32
    return %arg0, %c0_i32 : i32, i32
  }
  func.func @transform_1(%arg0: i32) -> (i32, i32) {
    %c0_i32 = arith.constant 0 : i32
    %c0_i32_0 = arith.constant 0 : i32
    %c0_i32_1 = arith.constant 0 : i32
    return %c0_i32, %c0_i32_0 : i32, i32
  }
  func.func @transform_2(%arg0: i32) -> (i32, i32) {
    %c0_i32 = arith.constant 0 : i32
    %c0_i32_0 = arith.constant 0 : i32
    %c0_i32_1 = arith.constant 0 : i32
    return %c0_i32, %c0_i32_0 : i32, i32
  }
  func.func @transform_3(%arg0: i32) -> (i32, i32) {
    %c0_i32 = arith.constant 0 : i32
    %c0_i32_0 = arith.constant 0 : i32
    %c0_i32_1 = arith.constant 0 : i32
    return %c0_i32, %c0_i32_0 : i32, i32
  }
  func.func @transform_4(%arg0: i32) -> i32 {
    %c0_i32 = arith.constant 0 : i32
    %c0_i32_0 = arith.constant 0 : i32
    return %c0_i32 : i32
  }
  func.func @transform_5(%arg0: i32) -> (i32, i32) {
    %c0_i32 = arith.constant 0 : i32
    %c0_i32_0 = arith.constant 0 : i32
    return %c0_i32, %arg0 : i32, i32
  }
}

</mosaic_0001>

<bundles_post_ra>
// kernel: simple_nn_forward.1
= control target key start
LH: loop header
LB: loop body
LE: loop exit
PB: predicated region body
PF: predicated region fallthrough
CT: control target
= control target key end

     0   :  { %vm83_vm0 = vcmask 130048   ;;  %s813_s0 = inlined_call_operand.vmem [shape: f32[256,16], index: 0, kind: input, shape index: {}]   ;;  %s814_s1 = inlined_call_operand.vmem [shape: bf16[16,64], index: 1, kind: input, shape index: {}]   ;;  %s815_s2 = inlined_call_operand.vmem [shape: f32[1,64], index: 2, kind: input, shape index: {}]   ;;  %s816_s3 = inlined_call_operand.vmem [shape: f32[1,64], index: 3, kind: input, shape index: {}]   ;;  %s817_s4 = inlined_call_operand.<no memory space> [shape: f32[1], index: 4, kind: input, shape index: {}]   ;;  %s818_s5 = inlined_call_operand.hbm [shape: f32[1,256], index: 5, kind: output, shape index: {}]  }
   0x1   :  { %v517_v0 = vld [vmem:[%s814_s1] sm:$0xff]  ;;  %v29_v1 = vld [vmem:[%s813_s0 + $0x30] sm:$0xff]  ;;  %v30_v2 = vld [vmem:[%s813_s0 + $0x38] sm:$0xff] }
   0x2   :  { %v58_v3 = vpack.c.bf16 %v30_v2, %v29_v1  ;;  %v45_v4 = vld [vmem:[%s813_s0 + $0xb0] sm:$0xff]  ;;  %v46_v5 = vld [vmem:[%s813_s0 + $0xb8] sm:$0xff]  ;;  %518 = vmatpush.bf16.msra.mxu1 %v517_v0  ;;  %520 = vmatpush.bf16.msra.mxu3 %v517_v0  ;;  %v23_v10 = vld [vmem:[%s813_s0] sm:$0xff] }
   0x3   :  { %v66_v6 = vpack.c.bf16 %v46_v5, %v45_v4  ;;  %519 = vmatpush.bf16.msra.mxu2 %v517_v0  ;;  %139 = vmatpush.bf16.msra.mxu0 %v517_v0  ;;  %v37_v7 = vld [vmem:[%s813_s0 + $0x70] sm:$0xff]  ;;  %v38_v8 = vld [vmem:[%s813_s0 + $0x78] sm:$0xff]  ;;  %v24_v11 = vld [vmem:[%s813_s0 + $0x8] sm:$0xff] }
   0x4   :  { %v62_v9 = vpack.c.bf16 %v38_v8, %v37_v7  ;;  %v55_v12 = vpack.c.bf16 %v24_v11, %v23_v10 }
   0x5   :  { %468 = vmatmul.msk.bf16.vlgmr.msra.gmra.mxu1 %vm83_vm0, %v58_v3  ;;  %476 = vmatmul.msk.bf16.vlgmr.msra.gmra.mxu3 %vm83_vm0, %v66_v6 }
   0x6   :  { %11 = vsyncpa [#allocation4], 0  ;;  %472 = vmatmul.msk.bf16.vlgmr.msra.gmra.mxu2 %vm83_vm0, %v62_v9  ;;  %465 = vmatmul.msk.bf16.vlgmr.msra.gmra.mxu0 %vm83_vm0, %v55_v12  ;;  %v31_v13 = vld [vmem:[%s813_s0 + $0x40] sm:$0xff]  ;;  %v32_v14 = vld [vmem:[%s813_s0 + $0x48] sm:$0xff]  ;;  %vm256_vm1 = vcmask 523264   ;;  %s452_s12 = sshll.u32 %s818_s5, 4  ;;  %s453_s12 = int_to_ptr.hbm [resolvable:$true] %s452_s12 }
   0x7   :  { %v47_v15 = vld [vmem:[%s813_s0 + $0xc0] sm:$0xff]  ;;  %v48_v16 = vld [vmem:[%s813_s0 + $0xc8] sm:$0xff]  ;;  %v59_v17 = vpack.c.bf16 %v32_v14, %v31_v13  ;;  %v25_v19 = vld [vmem:[%s813_s0 + $0x10] sm:$0xff]  ;;  %vm437_vm10 = vcmask 1040384  }
   0x8   :  { %v67_v18 = vpack.c.bf16 %v48_v16, %v47_v15  ;;  %v26_v20 = vld [vmem:[%s813_s0 + $0x18] sm:$0xff]  ;;  %v39_v21 = vld [vmem:[%s813_s0 + $0x80] sm:$0xff]  ;;  %v40_v23 = vld [vmem:[%s813_s0 + $0x88] sm:$0xff] }
   0x9   :  { %v56_v22 = vpack.c.bf16 %v26_v20, %v25_v19  ;;  %v63_v24 = vpack.c.bf16 %v40_v23, %v39_v21  ;;  %v33_v25 = vld [vmem:[%s813_s0 + $0x50] sm:$0xff]  ;;  %v34_v26 = vld [vmem:[%s813_s0 + $0x58] sm:$0xff]  ;;  %v27_v31 = vld [vmem:[%s813_s0 + $0x20] sm:$0xff] }
   0xa   :  { %v49_v27 = vld [vmem:[%s813_s0 + $0xd0] sm:$0xff]  ;;  %v50_v28 = vld [vmem:[%s813_s0 + $0xd8] sm:$0xff]  ;;  %v60_v29 = vpack.c.bf16 %v34_v26, %v33_v25  ;;  %v28_v32 = vld [vmem:[%s813_s0 + $0x28] sm:$0xff] }
   0xb   :  { %v68_v30 = vpack.c.bf16 %v50_v28, %v49_v27  ;;  %v41_v33 = vld [vmem:[%s813_s0 + $0x90] sm:$0xff]  ;;  %v57_v34 = vpack.c.bf16 %v28_v32, %v27_v31  ;;  %v42_v35 = vld [vmem:[%s813_s0 + $0x98] sm:$0xff]  ;;  %v35_v37 = vld [vmem:[%s813_s0 + $0x60] sm:$0xff] }
   0xc   :  { %v64_v36 = vpack.c.bf16 %v42_v35, %v41_v33  ;;  %v36_v38 = vld [vmem:[%s813_s0 + $0x68] sm:$0xff]  ;;  %v51_v39 = vld [vmem:[%s813_s0 + $0xe0] sm:$0xff]  ;;  %v53_v46 = vld [vmem:[%s813_s0 + $0xf0] sm:$0xff] }
   0xd   :  { %v52_v40 = vld [vmem:[%s813_s0 + $0xe8] sm:$0xff]  ;;  %v61_v41 = vpack.c.bf16 %v36_v38, %v35_v37  ;;  %v43_v43 = vld [vmem:[%s813_s0 + $0xa0] sm:$0xff]  ;;  %v54_v47 = vld [vmem:[%s813_s0 + $0xf8] sm:$0xff] }
   0xe   :  { %v69_v42 = vpack.c.bf16 %v52_v40, %v51_v39  ;;  %v44_v44 = vld [vmem:[%s813_s0 + $0xa8] sm:$0xff]  ;;  %v70_v48 = vpack.c.bf16 %v54_v47, %v53_v46  ;;  %v710_v54 = vld [vmem:[%s815_s2] ss:$0 sm:$0xff] }
   0xf   :  { %v65_v45 = vpack.c.bf16 %v44_v44, %v43_v43 }
  0x15   :  { %469 = vmatmul.msk.bf16.gmra.mxu1 %vm83_vm0, %v59_v17  ;;  %477 = vmatmul.msk.bf16.gmra.mxu3 %vm83_vm0, %v67_v18 }
  0x16   :  { %466 = vmatmul.msk.bf16.gmra.mxu0 %vm83_vm0, %v56_v22  ;;  %473 = vmatmul.msk.bf16.gmra.mxu2 %vm83_vm0, %v63_v24 }
  0x25   :  { %470 = vmatmul.msk.bf16.gmra.mxu1 %vm83_vm0, %v60_v29  ;;  %478 = vmatmul.msk.bf16.gmra.mxu3 %vm83_vm0, %v68_v30 }
  0x26   :  { %467 = vmatmul.msk.bf16.gmra.mxu0 %vm83_vm0, %v57_v34  ;;  %474 = vmatmul.msk.bf16.gmra.mxu2 %vm83_vm0, %v64_v36 }
  0x35   :  { %471 = vmatmul.msk.bf16.gmra.mxu1 %vm83_vm0, %v61_v41  ;;  %479 = vmatmul.msk.bf16.gmra.mxu3 %vm83_vm0, %v69_v42 }
  0x36   :  { %475 = vmatmul.msk.bf16.gmra.mxu2 %vm83_vm0, %v65_v45 }
  0x45   :  { %480 = vmatmul.msk.bf16.gmra.mxu3 %vm83_vm0, %v70_v48 }
  0x82   :  { %v156_v49 = vpop.f32.mrf.mxu1 }
  0x83   :  { %v720_v1 = vpop.f32.mrf.mxu0  ;;  %v157_v34 = vadd.f32 %v710_v54, %v156_v49 }
  0x85   :  { %v227_v40 = vmax.f32 %v157_v34, 0.0 }
  0x88   :  { %v703_v50 = vpop.f32.mrf.mxu3 }
  0x89   :  { %v176_v52 = vpop.f32.mrf.mxu2 }
  0x8a   :  { %v158_v51 = vpop.f32.mrf.mxu1  ;;  %v177_v57 = vadd.f32 %v710_v54, %v176_v52 }
  0x8b   :  { %v722_v4 = vpop.f32.mrf.mxu0  ;;  %v159_v28 = vadd.f32 %v710_v54, %v158_v51 }
  0x8c   :  { %v235_v61 = vmax.f32 %v177_v57, 0.0 }
  0x8d   :  { %v228_v35 = vmax.f32 %v159_v28, 0.0 }
  0x90   :  { %v705_v53 = vpop.f32.mrf.mxu3 }
  0x91   :  { %v178_v56 = vpop.f32.mrf.mxu2 }
  0x92   :  { %v161_v55 = vpop.f32.mrf.mxu1  ;;  %v179_v58 = vadd.f32 %v710_v54, %v178_v56 }
  0x93   :  { %v146_v7 = vpop.f32.mrf.mxu0  ;;  %v162_v25 = vadd.f32 %v710_v54, %v161_v55 }
  0x94   :  { %v236_v59 = vmax.f32 %v179_v58, 0.0  ;;  %v147_v55 = vadd.f32 %v710_v54, %v146_v7 }
  0x95   :  { %v229_v29 = vmax.f32 %v162_v25, 0.0 }
  0x96   :  { %481 = vmatpush.xpose.msk.msrb.mxu1 %vm256_vm1, %v236_v59  ;;  %v223_v59 = vmax.f32 %v147_v55, 0.0 }
  0x98   :  { %v714_v60 = vpop.f32.mrf.mxu3 }
  0x99   :  { %v728_v17 = vpop.f32.mrf.mxu2 }
  0x9a   :  { %v163_v62 = vpop.f32.mrf.mxu1  ;;  %482 = vmatpush.xpose.msk.msrb.mxu1 %vm256_vm1, %v235_v61  ;;  %v144_v61 = vadd.f32 %v710_v54, %v722_v4 }
  0x9b   :  { %v148_v16 = vpop.f32.mrf.mxu0  ;;  %v164_v22 = vadd.f32 %v710_v54, %v163_v62 }
  0x9c   :  { %v149_v47 = vadd.f32 %v710_v54, %v148_v16 }
  0x9d   :  { %v230_v26 = vmax.f32 %v164_v22, 0.0 }
  0x9e   :  { %v224_v56 = vmax.f32 %v149_v47, 0.0 }
  0xa0   :  { %v718_v63 = vpop.f32.mrf.mxu3 }
  0xa1   :  { %v735_v24 = vpop.f32.mrf.mxu2  ;;  %v204_v57 = vadd.f32 %v710_v54, %v718_v63  ;;  %v222_v63 = vmax.f32 %v144_v61, 0.0 }
  0xa2   :  { %v166_v0 = vpop.f32.mrf.mxu1 }
  0xa3   :  { %v167_v18 = vadd.f32 %v710_v54, %v166_v0  ;;  %v151_v23 = vpop.f32.mrf.mxu0  ;;  %v202_v0 = vadd.f32 %v710_v54, %v714_v60  ;;  %v197_v60 = vadd.f32 %v710_v54, %v703_v50 }
  0xa4   :  { %v152_v43 = vadd.f32 %v710_v54, %v151_v23 }
  0xa5   :  { %v231_v20 = vmax.f32 %v167_v18, 0.0  ;;  %v182_v18 = vadd.f32 %v710_v54, %v728_v17 }
  0xa6   :  { %v225_v48 = vmax.f32 %v152_v43, 0.0 }
  0xa8   :  { %v206_v2 = vpop.f32.mrf.mxu3 }
  0xa9   :  { %v186_v36 = vpop.f32.mrf.mxu2  ;;  %v207_v51 = vadd.f32 %v710_v54, %v206_v2  ;;  %v246_v2 = vmax.f32 %v204_v57, 0.0 }
  0xaa   :  { %v168_v3 = vpop.f32.mrf.mxu1 }
  0xab   :  { %v169_v13 = vadd.f32 %v710_v54, %v168_v3  ;;  %v153_v33 = vpop.f32.mrf.mxu0  ;;  %v247_v58 = vmax.f32 %v207_v51, 0.0  ;;  %v142_v3 = vadd.f32 %v710_v54, %v720_v1  ;;  %v253_v1 = vld [vmem:[%s816_s3] sm:$0x1] }
  0xac   :  { %v154_v39 = vadd.f32 %v710_v54, %v153_v33 }
  0xad   :  { %v232_v19 = vmax.f32 %v169_v13, 0.0  ;;  %v221_v4 = vmax.f32 %v142_v3, 0.0  ;;  %v187_v13 = vadd.f32 %v710_v54, %v186_v36 }
  0xae   :  { %v226_v44 = vmax.f32 %v154_v39, 0.0 }
  0xaf   :  { %v239_v16 = vmax.f32 %v187_v13, 0.0 }
  0xb0   :  { %v208_v5 = vpop.f32.mrf.mxu3 }
  0xb1   :  { %v209_v45 = vadd.f32 %v710_v54, %v208_v5  ;;  %v188_v49 = vpop.f32.mrf.mxu2  ;;  %v199_v5 = vadd.f32 %v710_v54, %v705_v53  ;;  %v243_v53 = vmax.f32 %v197_v60, 0.0 }
  0xb2   :  { %v171_v6 = vpop.f32.mrf.mxu1 }
  0xb3   :  { %v172_v10 = vadd.f32 %v710_v54, %v171_v6  ;;  %v248_v52 = vmax.f32 %v209_v45, 0.0  ;;  %v245_v6 = vmax.f32 %v202_v0, 0.0  ;;  %v244_v7 = vmax.f32 %v199_v5, 0.0 }
  0xb4   :  { %v440_v45 = vlaneseq }
  0xb5   :  { %v233_v14 = vmax.f32 %v172_v10, 0.0 }
  0xb6   :  { %vm442_vm11 = vcmp.lt.s32.totalorder %v440_v45, 256 }
  0xb8   :  { %v211_v8 = vpop.f32.mrf.mxu3 }
  0xb9   :  { %v212_v41 = vadd.f32 %v710_v54, %v211_v8  ;;  %v191_v62 = vpop.f32.mrf.mxu2 }
  0xba   :  { %v173_v9 = vpop.f32.mrf.mxu1  ;;  %v192_v10 = vadd.f32 %v710_v54, %v191_v62 }
  0xbb   :  { %v174_v11 = vadd.f32 %v710_v54, %v173_v9  ;;  %v249_v46 = vmax.f32 %v212_v41, 0.0 }
  0xbd   :  { %v234_v12 = vmax.f32 %v174_v11, 0.0  ;;  %v189_v11 = vadd.f32 %v710_v54, %v188_v49 }
  0xbf   :  { %483 = vmatpush.xpose.msk.msrb.mxu1 %vm256_vm1, %v234_v12  ;;  %v241_v12 = vmax.f32 %v192_v10, 0.0 }
  0xc0   :  { %v213_v15 = vpop.f32.mrf.mxu3 }
  0xc1   :  { %v214_v37 = vadd.f32 %v710_v54, %v213_v15  ;;  %v193_v8 = vpop.f32.mrf.mxu2  ;;  %v184_v15 = vadd.f32 %v710_v54, %v735_v24 }
  0xc2   :  { %v194_v9 = vadd.f32 %v710_v54, %v193_v8 }
  0xc3   :  { %484 = vmatpush.xpose.msk.msrb.mxu1 %vm256_vm1, %v233_v14  ;;  %v250_v42 = vmax.f32 %v214_v37, 0.0  ;;  %v240_v14 = vmax.f32 %v189_v11, 0.0 }
  0xc4   :  { %v242_v50 = vmax.f32 %v194_v9, 0.0 }
  0xc7   :  { %485 = vmatpush.xpose.msk.msrb.mxu1 %vm256_vm1, %v232_v19  ;;  %v238_v19 = vmax.f32 %v184_v15, 0.0 }
  0xc8   :  { %v216_v21 = vpop.f32.mrf.mxu3 }
  0xc9   :  { %v217_v31 = vadd.f32 %v710_v54, %v216_v21  ;;  %v255_v21 = vstv %s817_s4  ;;  %s557_s4 = smov [#allocation3]  }
  0xca   :  { %s450_s9 = sshll.u32 %s557_s4, 4  ;;  %s451_s9 = int_to_ptr.vmem [resolvable:$true] %s450_s9 }
  0xcb   :  { %486 = vmatpush.xpose.msk.msrb.mxu1 %vm256_vm1, %v231_v20  ;;  %v251_v38 = vmax.f32 %v217_v31, 0.0  ;;  %v237_v20 = vmax.f32 %v182_v18, 0.0 }
  0xcf   :  { %487 = vmatpush.xpose.msk.msrb.mxu1 %vm256_vm1, %v230_v26 }
  0xd0   :  { %v218_v27 = vpop.f32.mrf.mxu3 }
  0xd1   :  { %v219_v30 = vadd.f32 %v710_v54, %v218_v27 }
  0xd3   :  { %v252_v32 = vmax.f32 %v219_v30, 0.0  ;;  %488 = vmatpush.xpose.msk.msrb.mxu1 %vm256_vm1, %v229_v29 }
  0xd5   :  { %498 = vmatpush.xpose.msk.msrb.mxu2 %vm256_vm1, %v252_v32 }
  0xd7   :  { %489 = vmatpush.xpose.msk.msrb.mxu1 %vm256_vm1, %v228_v35 }
  0xd9   :  { %499 = vmatpush.xpose.msk.msrb.mxu2 %vm256_vm1, %v251_v38 }
  0xdb   :  { %490 = vmatpush.xpose.msk.msrb.mxu1 %vm256_vm1, %v227_v40 }
  0xdd   :  { %500 = vmatpush.xpose.msk.msrb.mxu2 %vm256_vm1, %v250_v42 }
  0xdf   :  { %491 = vmatpush.xpose.msk.msrb.mxu1 %vm256_vm1, %v226_v44 }
  0xe1   :  { %501 = vmatpush.xpose.msk.msrb.mxu2 %vm256_vm1, %v249_v46 }
  0xe3   :  { %492 = vmatpush.xpose.msk.msrb.mxu1 %vm256_vm1, %v225_v48 }
  0xe5   :  { %502 = vmatpush.xpose.msk.msrb.mxu2 %vm256_vm1, %v248_v52 }
  0xe7   :  { %493 = vmatpush.xpose.msk.msrb.mxu1 %vm256_vm1, %v224_v56 }
  0xe9   :  { %503 = vmatpush.xpose.msk.msrb.mxu2 %vm256_vm1, %v247_v58 }
  0xeb   :  { %494 = vmatpush.xpose.msk.msrb.mxu1 %vm256_vm1, %v223_v59 }
  0xed   :  { %504 = vmatpush.xpose.msk.msrb.mxu2 %vm256_vm1, %v246_v2 }
  0xef   :  { %495 = vmatpush.xpose.msk.msrb.mxu1 %vm256_vm1, %v222_v63 }
  0xf1   :  { %505 = vmatpush.xpose.msk.msrb.mxu2 %vm256_vm1, %v245_v6 }
  0xf3   :  { %496 = vmatpush.xpose.msk.msrb.mxu1 %vm256_vm1, %v221_v4 }
  0xf5   :  { %506 = vmatpush.xpose.msk.msrb.mxu2 %vm256_vm1, %v244_v7 }
  0xf6   :  { %497 = vmatmul.msk.f32.vlgmr.msrb.gmra.mxu1 %vm256_vm1, %v253_v1 }
  0xf9   :  { %507 = vmatpush.xpose.msk.msrb.mxu2 %vm256_vm1, %v243_v53 }
  0xfd   :  { %508 = vmatpush.xpose.msk.msrb.mxu2 %vm256_vm1, %v242_v50 }
 0x101   :  { %509 = vmatpush.xpose.msk.msrb.mxu2 %vm256_vm1, %v241_v12 }
 0x105   :  { %510 = vmatpush.xpose.msk.msrb.mxu2 %vm256_vm1, %v240_v14 }
 0x109   :  { %511 = vmatpush.xpose.msk.msrb.mxu2 %vm256_vm1, %v239_v16 }
 0x10d   :  { %512 = vmatpush.xpose.msk.msrb.mxu2 %vm256_vm1, %v238_v19 }
 0x111   :  { %513 = vmatpush.xpose.msk.msrb.mxu2 %vm256_vm1, %v237_v20 }
 0x114   :  { %514 = vmatmul.msk.f32.vlgmr.msrb.gmra.mxu2 %vm256_vm1, %v253_v1 }
 0x173   :  { %v373_v22 = vpop.f32.mrf.mxu1 }
 0x174   :  { %v374_v23 = vadd.f32 %v373_v22, %v255_v21 }
 0x176   :  { %v515_v24 = vmul.f32 -1.442695, %v374_v23 }
 0x178   :  { %523 = vpow2.f32 %v515_v24 }
 0x17e   :  { %v524_v25 = vpop.eup %523 }
 0x17f   :  { %v402_v26 = vadd.f32 1.0, %v524_v25 }
 0x181   :  { %525 = vrcp.f32 %v402_v26  ;;  %vm409_vm2 = vweird.f32 %v402_v26  ;;  %v413_v37 = vand.u32 2147483647, %v402_v26  ;;  %v415_v38 = vand.u32 2147483648, %v402_v26 }
 0x183   :  { %v416_v46 = vor.u32 1.1754944e-38, %v415_v38  ;;  %vm414_vm8 = vcmp.eq.f32.partialorder %v413_v37, 8.507059e+37 }
 0x187   :  { %v526_v28 = vpop.eup %525 }
 0x188   :  { %v405_v31 = vmul.f32 %v526_v28, %v402_v26  ;;  %vm410_vm3 = vweird.f32 %v526_v28 }
 0x189   :  { %vm804_vm5 = vmor %vm409_vm2, %vm410_vm3 }
 0x18a   :  { %v406_v32 = vsub.f32 1.0, %v405_v31 }
 0x18c   :  { %v407_v35 = vmul.f32 %v526_v28, %v406_v32 }
 0x18e   :  { %v408_v40 = vadd.f32 %v526_v28, %v407_v35 }
 0x190   :  { %v412_v48 = vsel %vm804_vm5, %v526_v28, %v408_v40 }
 0x191   :  { %v417_v55 = vsel %vm414_vm8, %v416_v46, %v412_v48 }
 0x197   :  { %v393_v27 = vpop.f32.mrf.mxu2 }
 0x198   :  { %v394_v54 = vadd.f32 %v393_v27, %v255_v21 }
 0x19a   :  { %v516_v17 = vmul.f32 -1.442695, %v394_v54 }
 0x19c   :  { %527 = vpow2.f32 %v516_v17 }
 0x1a2   :  { %v528_v29 = vpop.eup %527 }
 0x1a3   :  { %v403_v30 = vadd.f32 1.0, %v528_v29 }
 0x1a5   :  { %529 = vrcp.f32 %v403_v30  ;;  %v430_v39 = vand.u32 2147483648, %v403_v30  ;;  %v428_v42 = vand.u32 2147483647, %v403_v30  ;;  %vm424_vm6 = vweird.f32 %v403_v30 }
 0x1a7   :  { %v431_v47 = vor.u32 1.1754944e-38, %v430_v39  ;;  %vm429_vm9 = vcmp.eq.f32.partialorder %v428_v42, 8.507059e+37 }
 0x1ab   :  { %v530_v33 = vpop.eup %529 }
 0x1ac   :  { %v420_v34 = vmul.f32 %v530_v33, %v403_v30  ;;  %vm425_vm4 = vweird.f32 %v530_v33 }
 0x1ad   :  { %vm426_vm7 = vmor %vm424_vm6, %vm425_vm4 }
 0x1ae   :  { %v421_v36 = vsub.f32 1.0, %v420_v34 }
 0x1b0   :  { %v422_v41 = vmul.f32 %v530_v33, %v421_v36 }
 0x1b2   :  { %v423_v44 = vadd.f32 %v530_v33, %v422_v41 }
 0x1b4   :  { %v427_v49 = vsel %vm426_vm7, %v530_v33, %v423_v44 }
 0x1b5   :  { %v432_v51 = vsel %vm429_vm9, %v431_v47, %v427_v49 }
 0x1b6   :  { %v436_v52 = vrot.slane %v432_v51, 7 }
 0x1b8   :  { %v438_v56 = vsel %vm437_vm10, %v417_v55, %v436_v52 }
 0x1b9   :  { %444 = vst.msk [vmem:[#allocation3] sm:$0x3] %vm442_vm11, %v438_v56 }
 0x1ba   :  { %455 = dma.vmem_to_hbm [thread:$0]  %s451_s9, 32, %s453_s12, [#allocation4]  }
 0x1bb   :  { %555 = dma.done.wait [#allocation4], 32  }
 0x1bc   :  { %556 = vsyncadd [#allocation4], 4294967264 }
 0x1bd   :  { %460 = vsyncpa [#allocation4], 1 }

</bundles_post_ra>
